<compile_context>
chip_gen: v7x
topology: tpu7x:2x2x1
jax: 0.10.0
libtpu: 0.0.40
codegen_flags: <defaults>
</compile_context>

<pallas_src>
import functools

import jax
import jax.numpy as jnp
from jax.experimental import pallas as pl
from jax.experimental.pallas import tpu as pltpu

LANES = 128
NUM_CORES = 2                       # v7x has 2 TensorCores; serial (cheap) elsewhere
SMALL_INPUT_ELEMS = 65536           # below this a fused XLA reduce beats any launch
DEFAULT_BLOCK_BYTES = 4 * 1024 * 1024   # ~4 MiB of each input per grid step


def _sublane_align(dtype) -> int:
    """Row alignment for sublane packing: 8 (32-bit), 16 (16-bit), 32 (8-bit)."""
    itemsize = jnp.dtype(dtype).itemsize
    return max(8, 32 // max(itemsize, 1))


def _mse_partial_kernel(pred_ref, tgt_ref, out_ref, *, tile_rows,
                        steps_per_core, rows_total):
    c = pl.program_id(0)            # core-partition axis ("parallel")
    s = pl.program_id(1)            # streaming / reduction axis ("arbitrary")

    @pl.when(s == 0)
    def _init():
        out_ref[...] = jnp.zeros_like(out_ref)

    diff = pred_ref[...].astype(jnp.float32) - tgt_ref[...].astype(jnp.float32)
    sq = diff * diff

    start_row = (c * steps_per_core + s) * tile_rows
    block_end = start_row + tile_rows

    @pl.when(block_end <= rows_total)
    def _bulk():
        # Steady state: unmasked; fold (tile_rows,128) -> (8,128) with pure
        # elementwise vreg adds (no cross-sublane / cross-lane reduce here).
        out_ref[...] += jnp.sum(sq.reshape(-1, 8, LANES), axis=0)[None]

    @pl.when(block_end > rows_total)
    def _ragged_tail():
        # Only the final block (and a possible dead block on the megacore
        # split) ever lands here: mask rows past the end of the slab.
        row_ids = jax.lax.broadcasted_iota(jnp.int32, sq.shape, 0)
        valid = (start_row + row_ids) < rows_total
        sq_m = jnp.where(valid, sq, 0.0)
        out_ref[...] += jnp.sum(sq_m.reshape(-1, 8, LANES), axis=0)[None]


def landmark_loss(geometry_pred, geometry_graph, *,
                  target_block_bytes=DEFAULT_BLOCK_BYTES,
                  min_pallas_elems=SMALL_INPUT_ELEMS):
    """MSE loss (mean reduction); matches F.mse_loss(pred, target) in float32."""
    assert geometry_pred.shape == geometry_graph.shape
    n_elems = geometry_pred.size
    if n_elems == 0:                 # F.mse_loss on empty input -> NaN
        return jnp.float32(jnp.nan)

    if n_elems < min_pallas_elems:
        # Small-input fast path (nominal 2x66x2 landmarks = 264 elements):
        # fused XLA reduce is strictly faster than a Pallas launch + pad.
        d = geometry_pred.astype(jnp.float32) - geometry_graph.astype(jnp.float32)
        return jnp.mean(d * d)

    pred_flat = geometry_pred.reshape(-1)    # original dtype, free reshape
    tgt_flat = geometry_graph.reshape(-1)

    align = max(_sublane_align(pred_flat.dtype), _sublane_align(tgt_flat.dtype))
    rows = pl.cdiv(n_elems, LANES)
    rows = pl.cdiv(rows, align) * align
    padded = rows * LANES
    if padded != n_elems:
        # Zero pad for both inputs -> diff == 0 in the tail, contributes
        # nothing to the sum; only the over-read past `rows` needs the mask.
        # TODO(synk): pad-free ragged path (memory_space=pl.ANY + manual
        # chunked DMA) to avoid the full-array pad copies for huge inputs.
        pred_flat = jnp.pad(pred_flat, (0, padded - n_elems))
        tgt_flat = jnp.pad(tgt_flat, (0, padded - n_elems))
    pred2d = pred_flat.reshape(rows, LANES)
    tgt2d = tgt_flat.reshape(rows, LANES)

    # Byte-sized blocks: ~target_block_bytes of each input per grid step, so
    # bf16/int8 inputs get 2x/4x the rows of f32 (dtype-independent roofline).
    max_itemsize = max(jnp.dtype(pred2d.dtype).itemsize,
                       jnp.dtype(tgt2d.dtype).itemsize)
    tile_rows = (int(target_block_bytes) // (max_itemsize * LANES)) // align * align
    tile_rows = max(align, min(tile_rows, rows))

    nblocks = pl.cdiv(rows, tile_rows)
    steps_per_core = pl.cdiv(nblocks, NUM_CORES)

    def in_index_map(c, s):
        # Clamp so a dead block past the slab end (odd block count) just
        # re-reads the last block; its contribution is zeroed by the row mask.
        blk = c * steps_per_core + s
        return (jnp.minimum(blk, nblocks - 1), 0)

    kernel = functools.partial(
        _mse_partial_kernel,
        tile_rows=tile_rows,
        steps_per_core=steps_per_core,
        rows_total=rows,
    )

    partials = pl.pallas_call(
        kernel,
        out_shape=jax.ShapeDtypeStruct((NUM_CORES, 8, LANES), jnp.float32),
        grid_spec=pltpu.PrefetchScalarGridSpec(
            num_scalar_prefetch=0,
            grid=(NUM_CORES, steps_per_core),
            in_specs=[
                pl.BlockSpec((tile_rows, LANES), in_index_map),
                pl.BlockSpec((tile_rows, LANES), in_index_map),
            ],
            out_specs=pl.BlockSpec((1, 8, LANES), lambda c, s: (c, 0, 0)),
        ),
        compiler_params=pltpu.CompilerParams(
            dimension_semantics=("parallel", "arbitrary"),
            vmem_limit_bytes=32 * 1024 * 1024,
        ),
    )(pred2d, tgt2d)

    # Single final core/sublane/lane reduce + exact divide by the TRUE count.
    return jnp.sum(partials) / jnp.float32(n_elems)


if __name__ == "__main__":
    key = jax.random.PRNGKey(0)
    k1, k2, k3, k4, k5, k6 = jax.random.split(key, 6)

    # Nominal LandMarkLoss shapes: batch=2, 66 sparse 2D keypoints.
    geometry_pred = jax.random.normal(k1, (2, 66, 2), dtype=jnp.float32)
    geometry_graph = jax.random.normal(k2, (2, 66, 2), dtype=jnp.float32)
    ref = jnp.mean((geometry_pred - geometry_graph) ** 2)

    # Force the Pallas kernel even at this tiny size (exercises padding, the
    # ragged mask, and the 2-core grid layout).
    loss = landmark_loss(geometry_pred, geometry_graph, min_pallas_elems=0)
    jax.block_until_ready(loss)
    assert jnp.allclose(loss, ref, rtol=1e-6, atol=1e-6), (loss, ref)

    # Default path (small-input fallback) must agree as well.
    loss_fb = landmark_loss(geometry_pred, geometry_graph)
    jax.block_until_ready(loss_fb)
    assert jnp.allclose(loss_fb, ref, rtol=1e-6, atol=1e-6), (loss_fb, ref)

    # bf16 ragged input: dtype pass-through, padding, multi-step grid,
    # per-core split and last-block masking (small block bytes force >1 step).
    a = jax.random.normal(k3, (3, 517, 19), dtype=jnp.bfloat16)
    b = jax.random.normal(k4, (3, 517, 19), dtype=jnp.bfloat16)
    loss2 = landmark_loss(a, b, target_block_bytes=16 * 1024, min_pallas_elems=0)
    jax.block_until_ready(loss2)
    ref2 = jnp.mean((a.astype(jnp.float32) - b.astype(jnp.float32)) ** 2)
    assert jnp.allclose(loss2, ref2, rtol=2e-5, atol=1e-6), (loss2, ref2)

    # f32 exact multiple of the slab: no pad, no ragged block, multi-step.
    c = jax.random.normal(k5, (64, 128), dtype=jnp.float32)
    d = jax.random.normal(k6, (64, 128), dtype=jnp.float32)
    loss3 = landmark_loss(c, d, target_block_bytes=8 * 1024, min_pallas_elems=0)
    jax.block_until_ready(loss3)
    ref3 = jnp.mean((c - d) ** 2)
    assert jnp.allclose(loss3, ref3, rtol=1e-6, atol=1e-6), (loss3, ref3)

    print("KERNEL_OK")
</pallas_src>

<mosaic_0001>
module attributes {stable_mosaic.version = 11 : i64} {
  func.func @_mse_partial_kernel(%arg0: i32, %arg1: i32, %arg2: memref<8x128xf32, #tpu.memory_space<vmem>>, %arg3: memref<8x128xf32, #tpu.memory_space<vmem>>, %arg4: memref<1x8x128xf32, #tpu.memory_space<vmem>>) attributes {dimension_semantics = [#tpu.dimension_semantics<parallel>, #tpu.dimension_semantics<arbitrary>], iteration_bounds = array<i64: 2, 1>, scalar_prefetch = 0 : i64, scratch_operands = 0 : i64, tpu.core_type = #tpu.core_type<tc>, window_params = [{transform_indices = @transform_0, window_bounds = array<i64: 8, 128>}, {transform_indices = @transform_1, window_bounds = array<i64: 8, 128>}, {transform_indices = @transform_2, window_bounds = array<i64: 1, 8, 128>}]} {
    %c0_i32 = arith.constant 0 : i32
    %0 = arith.cmpi eq, %arg1, %c0_i32 : i32
    %1 = arith.extui %0 : i1 to i32
    %c0_i32_0 = arith.constant 0 : i32
    %2 = arith.cmpi ne, %1, %c0_i32_0 : i32
    scf.if %2 {
      %cst = arith.constant 0.000000e+00 : f32
      %17 = vector.broadcast %cst : f32 to vector<1x8x128xf32>
      %c0_9 = arith.constant 0 : index
      %c0_10 = arith.constant 0 : index
      %c0_11 = arith.constant 0 : index
      %18 = vector.load %arg4[%c0_9, %c0_10, %c0_11] : memref<1x8x128xf32, #tpu.memory_space<vmem>>, vector<1x8x128xf32>
      tpu.vector_store %arg4[%c0_9, %c0_10, %c0_11], %17 {strides = array<i32>} : memref<1x8x128xf32, #tpu.memory_space<vmem>>, vector<1x8x128xf32>,
    } else {
    }
    %c0 = arith.constant 0 : index
    %c0_1 = arith.constant 0 : index
    %3 = vector.load %arg2[%c0, %c0_1] : memref<8x128xf32, #tpu.memory_space<vmem>>, vector<8x128xf32>
    %c0_2 = arith.constant 0 : index
    %c0_3 = arith.constant 0 : index
    %4 = vector.load %arg3[%c0_2, %c0_3] : memref<8x128xf32, #tpu.memory_space<vmem>>, vector<8x128xf32>
    %5 = arith.subf %3, %4 : vector<8x128xf32>
    %6 = arith.mulf %5, %5 : vector<8x128xf32>
    %c1_i32 = arith.constant 1 : i32
    %7 = arith.muli %arg0, %c1_i32 : i32
    %8 = arith.addi %7, %arg1 : i32
    %c8_i32 = arith.constant 8 : i32
    %9 = arith.muli %8, %c8_i32 : i32
    %c8_i32_4 = arith.constant 8 : i32
    %10 = arith.addi %9, %c8_i32_4 : i32
    %c8_i32_5 = arith.constant 8 : i32
    %11 = arith.cmpi sle, %10, %c8_i32_5 : i32
    %12 = arith.extui %11 : i1 to i32
    %c0_i32_6 = arith.constant 0 : i32
    %13 = arith.cmpi ne, %12, %c0_i32_6 : i32
    scf.if %13 {
      %c0_9 = arith.constant 0 : index
      %c0_10 = arith.constant 0 : index
      %c0_11 = arith.constant 0 : index
      %17 = vector.load %arg4[%c0_9, %c0_10, %c0_11] : memref<1x8x128xf32, #tpu.memory_space<vmem>>, vector<1x8x128xf32>
      %18 = vector.shape_cast %6 : vector<8x128xf32> to vector<1x8x128xf32>
      %cst = arith.constant dense<0.000000e+00> : vector<8x128xf32>
      %19 = vector.multi_reduction <add>, %18, %cst [0] : vector<1x8x128xf32> to vector<8x128xf32>
      %20 = vector.shape_cast %19 : vector<8x128xf32> to vector<1x8x128xf32>
      %21 = arith.addf %17, %20 : vector<1x8x128xf32>
      %c0_12 = arith.constant 0 : index
      %c0_13 = arith.constant 0 : index
      %c0_14 = arith.constant 0 : index
      %22 = vector.load %arg4[%c0_12, %c0_13, %c0_14] : memref<1x8x128xf32, #tpu.memory_space<vmem>>, vector<1x8x128xf32>
      tpu.vector_store %arg4[%c0_12, %c0_13, %c0_14], %21 {strides = array<i32>} : memref<1x8x128xf32, #tpu.memory_space<vmem>>, vector<1x8x128xf32>,
    } else {
    }
    %c8_i32_7 = arith.constant 8 : i32
    %14 = arith.cmpi sgt, %10, %c8_i32_7 : i32
    %15 = arith.extui %14 : i1 to i32
    %c0_i32_8 = arith.constant 0 : i32
    %16 = arith.cmpi ne, %15, %c0_i32_8 : i32
    scf.if %16 {
      %17 = tpu.iota {dimensions = array<i32: 0>} : vector<8x128xi32>
      %18 = vector.broadcast %9 : i32 to vector<8x128xi32>
      %19 = arith.addi %18, %17 : vector<8x128xi32>
      %c8_i32_9 = arith.constant 8 : i32
      %20 = vector.broadcast %c8_i32_9 : i32 to vector<8x128xi32>
      %21 = arith.cmpi slt, %19, %20 : vector<8x128xi32>
      %cst = arith.constant 0.000000e+00 : f32
      %22 = vector.broadcast %cst : f32 to vector<8x128xf32>
      %23 = arith.select %21, %6, %22 : vector<8x128xi1>, vector<8x128xf32>
      %c0_10 = arith.constant 0 : index
      %c0_11 = arith.constant 0 : index
      %c0_12 = arith.constant 0 : index
      %24 = vector.load %arg4[%c0_10, %c0_11, %c0_12] : memref<1x8x128xf32, #tpu.memory_space<vmem>>, vector<1x8x128xf32>
      %25 = vector.shape_cast %23 : vector<8x128xf32> to vector<1x8x128xf32>
      %cst_13 = arith.constant dense<0.000000e+00> : vector<8x128xf32>
      %26 = vector.multi_reduction <add>, %25, %cst_13 [0] : vector<1x8x128xf32> to vector<8x128xf32>
      %27 = vector.shape_cast %26 : vector<8x128xf32> to vector<1x8x128xf32>
      %28 = arith.addf %24, %27 : vector<1x8x128xf32>
      %c0_14 = arith.constant 0 : index
      %c0_15 = arith.constant 0 : index
      %c0_16 = arith.constant 0 : index
      %29 = vector.load %arg4[%c0_14, %c0_15, %c0_16] : memref<1x8x128xf32, #tpu.memory_space<vmem>>, vector<1x8x128xf32>
      tpu.vector_store %arg4[%c0_14, %c0_15, %c0_16], %28 {strides = array<i32>} : memref<1x8x128xf32, #tpu.memory_space<vmem>>, vector<1x8x128xf32>,
    } else {
    }
    return
  }
  func.func @transform_0(%arg0: i32, %arg1: i32) -> (i32, i32) {
    %c1_i32 = arith.constant 1 : i32
    %0 = arith.muli %arg0, %c1_i32 : i32
    %1 = arith.addi %0, %arg1 : i32
    %c0_i32 = arith.constant 0 : i32
    %2 = arith.minsi %1, %c0_i32 : i32
    %c0_i32_0 = arith.constant 0 : i32
    %c0_i32_1 = arith.constant 0 : i32
    return %2, %c0_i32_0 : i32, i32
  }
  func.func @transform_1(%arg0: i32, %arg1: i32) -> (i32, i32) {
    %c1_i32 = arith.constant 1 : i32
    %0 = arith.muli %arg0, %c1_i32 : i32
    %1 = arith.addi %0, %arg1 : i32
    %c0_i32 = arith.constant 0 : i32
    %2 = arith.minsi %1, %c0_i32 : i32
    %c0_i32_0 = arith.constant 0 : i32
    %c0_i32_1 = arith.constant 0 : i32
    return %2, %c0_i32_0 : i32, i32
  }
  func.func @transform_2(%arg0: i32, %arg1: i32) -> (i32, i32, i32) {
    %c0_i32 = arith.constant 0 : i32
    %c0_i32_0 = arith.constant 0 : i32
    %c0_i32_1 = arith.constant 0 : i32
    return %arg0, %c0_i32, %c0_i32_0 : i32, i32, i32
  }
}

</mosaic_0001>

<bundles_post_ra>
// kernel: tpu_custom_call.1
= control target key start
LH: loop header
LB: loop body
LE: loop exit
PB: predicated region body
PF: predicated region fallthrough
CT: control target
= control target key end

     0   :  { %7 = vsyncpa [#allocation3], 0  ;;  %s880_s0 = inlined_call_operand.hbm [shape: f32[8,128], index: 0, kind: input, shape index: {}]   ;;  %s881_s1 = inlined_call_operand.hbm [shape: f32[8,128], index: 1, kind: input, shape index: {}]   ;;  %s882_s2 = inlined_call_operand.hbm [shape: f32[2,8,128], index: 2, kind: output, shape index: {}]  }
   0x1   :  { %9 = vsyncpa [#allocation3 + $0x1], 0 }
   0x2   :  { %10 = vsyncpa [#allocation6], 0 }
   0x3   :  { %12 = vsyncpa [#allocation6 + $0x1], 0 }
   0x4   :  { %13 = vsyncpa [#allocation4], 0 }
   0x5   :  { %15 = vsyncpa [#allocation4 + $0x1], 0  ;;  %s680_s9 = smov 0   ;;  %s682_s10 = smov 0  }
   0x6   :  { %s684_s11 = smov 0   ;;  %s686_s12 = smov 0  }
   0x7   :  { %s688_s13 = smov 0   ;;  %s690_s14 = smov 0  }
   0x8   :  { %s692_s15 = smov 0   ;;  %s694_s16 = smov 0  }
   0x9 LB: > { %s381_s17 = sadd.s32 4294967295, %s659_s16   ;;  %s382_s18 = sadd.s32 4294967294, %s659_s16   ;;  %s659_s16 = sphi %s694_s16, %s21_s16   ;;  %s655_s15 = sphi %s692_s15, %s903_s15   ;;  %s651_s14 = sphi %s690_s14, %s902_s14   ;;  %s647_s13 = sphi %s688_s13, %s870_s13   ;;  %s643_s12 = sphi %s686_s12, %s901_s12   ;;  %s639_s11 = sphi %s684_s11, %s900_s11   ;;  %s635_s10 = sphi %s682_s10, %s899_s10   ;;  %s631_s9 = sphi %s680_s9, %s898_s9  }
   0xa   : > { %s33_s19 = sadd.s32 1, %s655_s15  ;;  %p628_p1 = scmp.ne.s32.totalorder %s647_s13, 0 }
   0xb   : > { %p35_p0 = scmp.ge.s32.totalorder %s33_s19, 2  ;;  %p54_p2 = scmp.eq.s32.totalorder %s659_s16, 0 }
   0xc   : > { %p59_p3 = scmp.ne.s32.totalorder %s647_s13, %s643_s12  ;;  %p60_p5 = scmp.eq.s32.totalorder %s381_s17, 0 }
   0xd   : > { %s905_s19 = smov (%p35_p0, %s33_s19), 0  ;;  %p726_p4 = por %p628_p1, %p54_p2 }
   0xe   : > { %p730_p6 = por %p60_p5, %p59_p3  ;;  %s101_s22 = ssub.s32 %s655_s15, %s905_s19 }
   0xf   : > { %p102_p7 = scmp.eq.s32.totalorder %s101_s22, 0  ;;  %s104_s23 = sadd.s32 1, %s639_s11 }
  0x10   : > { %s886_s21 = scalar_select %p730_p6, 1, 0 }
  0x11   : > { %s738_s24 = scalar_select %p102_p7, %s639_s11, %s104_s23  }
  0x12   : > { %p114_p8 = scmp.ne.s32.totalorder %s639_s11, %s635_s10  ;;  %p115_p9 = scmp.eq.s32.totalorder %s381_s17, 1 }
  0x13   : > { %p120_p10 = scmp.ne.s32.totalorder %s635_s10, %s631_s9  ;;  %p121_p11 = scmp.eq.s32.totalorder %s382_s18, 1 }
  0x14   : > { %p744_p12 = por %p115_p9, %p114_p8  ;;  %p417_p1 = scmp.lt.s32.totalorder %s659_s16, 2 }
  0x15   : > { %p749_p0 = por %p121_p11, %p120_p10  ;;  %s661_s27 = smov [#allocation2]  }
  0x16   : > { %s887_s25 = scalar_select %p744_p12, 1, 0 }
  0x17   : > { %s888_s26 = scalar_select %p749_p0, 1, 0 }
  0x18   : > { %s155_s28 = sshll.u32 %s661_s27, 4  ;;  %p756_p2 = pnand %p417_p1, %p726_p4  ;;  %s156_s28 = int_to_ptr.vmem [resolvable:$true] %s155_s28 }
  0x19   : > { %s492_s4 = scalar_lea.hbm %s880_s0, 128 }
  0x1a   : > { %p493_p7 = scmp.ne.s32.totalorder %s880_s0, %s492_s4  ;;  %p494_p8 = pneg %p756_p2 }
  0x1b   : > { %p499_p10 = scmp.lt.u32.totalorder %s492_s4, %s492_s4  ;;  %p501_p11 = scmp.lt.u32.totalorder %s492_s4, %s880_s0 }
  0x1c   : > { %p495_p4 = pnand %p494_p8, %p493_p7 }
  0x1d   : > { %p502_p1 = por %p501_p11, %p499_p10 }
  0x1e   : > { %p496_p9 = pneg %p495_p4 }
  0x20   : > { %p503_p13 = pnand %p502_p1, %p496_p9 }
  0x22   : > { %506 = shalt.err (!%p503_p13)
}
  0x23   : > { %s507_s12 = scalar_lea.vmem %s156_s28, 128  ;;  %s514_s17 = scalar_lea.vmem %s156_s28, 256 }
  0x24   : > { %p508_p3 = scmp.ne.s32.totalorder %s156_s28, %s507_s12  ;;  %p515_p12 = scmp.lt.s32.totalorder %s156_s28, %s156_s28 }
  0x25   : > { %p516_p6 = scmp.lt.s32.totalorder %s514_s17, %s507_s12 }
  0x26   : > { %p510_p5 = pnand %p508_p3, %p494_p8 }
  0x27   : > { %p517_p7 = por %p516_p6, %p515_p12 }
  0x28   : > { %p511_p0 = pneg %p510_p5 }
  0x2a   : > { %p518_p4 = pnand %p517_p7, %p511_p0 }
  0x2c   : > { %521 = shalt.err (!%p518_p4)
}
  0x2d   : > { %409 = dma.hbm_to_vmem [thread:$0]  (!%p756_p2), %s880_s0, 128, %s156_s28, [#allocation3]  }
  0x2e   : > { %p890_p13 = scmp.lt.s32.totalorder %s659_s16, 3  ;;  %p891_p9 = scmp.ge.s32.totalorder %s659_s16, 1 }
  0x2f   : > { %s662_s23 = smov [#allocation5]   ;;  %s522_s4 = scalar_lea.hbm %s881_s1, 128 }
  0x30   : > { %p788_p10 = pnand %p891_p9, %p890_p13  ;;  %s176_s27 = sshll.u32 %s662_s23, 4  ;;  %s177_s27 = int_to_ptr.vmem [resolvable:$true] %s176_s27 }
  0x31   : > { %p523_p6 = scmp.ne.s32.totalorder %s881_s1, %s522_s4  ;;  %p529_p3 = scmp.lt.u32.totalorder %s522_s4, %s522_s4 }
  0x32   : > { %s892_s22 = scalar_select %p788_p10, 1, 0 }
  0x33   : > { %p525_p12 = pnand %p523_p6, %p494_p8  ;;  %p531_p5 = scmp.lt.u32.totalorder %s522_s4, %s881_s1 }
  0x35   : > { %p526_p0 = pneg %p525_p12  ;;  %p532_p11 = por %p531_p5, %p529_p3 }
  0x37   : > { %p533_p1 = pnand %p532_p11, %p526_p0 }
  0x39   : > { %536 = shalt.err (!%p533_p1)
}
  0x3a   : > { %s537_s8 = scalar_lea.vmem %s177_s27, 128  ;;  %s544_s12 = scalar_lea.vmem %s177_s27, 256 }
  0x3b   : > { %p538_p7 = scmp.ne.s32.totalorder %s177_s27, %s537_s8  ;;  %p545_p9 = scmp.lt.s32.totalorder %s177_s27, %s177_s27 }
  0x3c   : > { %p546_p10 = scmp.lt.s32.totalorder %s544_s12, %s537_s8 }
  0x3d   : > { %p540_p4 = pnand %p538_p7, %p494_p8 }
  0x3e   : > { %p547_p6 = por %p546_p10, %p545_p9 }
  0x3f   : > { %p541_p13 = pneg %p540_p4 }
  0x41   : > { %p548_p12 = pnand %p547_p6, %p541_p13 }
  0x43   : > { %551 = shalt.err (!%p548_p12)
}
  0x44   : > { %412 = dma.hbm_to_vmem [thread:$0]  (!%p756_p2), %s881_s1, 128, %s177_s27, [#allocation6]  }
  0x45   : > { %p893_p0 = scmp.ne.s32.totalorder %s892_s22, 0 }
  0x46   : > { %s187_s20 = sand.u32 (!%p893_p0), 1, %s647_s13   ;;  %p894_p8 = scmp.ne.s32.totalorder (!%p893_p0), %s886_s21, 0 }
  0x47   : > { %185 = sbr.rel (%p893_p0) target bundleno = 132 (0x84), region = 28  ;;  %s390_s23 = sshll.u32 (!%p893_p0), %s187_s20, 3 }
  0x48   : > { %s188_s30 = scalar_lea.sflag (!%p893_p0), [#allocation3], %s187_s20  ;;  %s191_s3 = scalar_lea.vmem (!%p893_p0), [#allocation2], %s390_s23 }
  0x4e   : > { %617 = dma.done.wait (%p894_p8), %s188_s30, 128  }
  0x4f   : > { %619 = vsyncadd (%p894_p8), %s188_s30, 4294967168  ;;  %s197_s29 = scalar_lea.sflag [#allocation6], %s187_s20  ;;  %s200_s4 = scalar_lea.vmem [#allocation5], %s390_s23 }
  0x50   : > { %621 = dma.done.wait (%p894_p8), %s197_s29, 128  }
  0x51   : > { %623 = vsyncadd (%p894_p8), %s197_s29, 4294967168  ;;  %s223_s22 = sand.u32 1, %s635_s10   ;;  %s393_s27 = sshll.u32 %s651_s14, 3  ;;  %v663_v0 = vmov 0.0   ;;  %v237_v1 = vld [vmem:[%s191_s3] sm:$0xff]  ;;  %v238_v2 = vld [vmem:[%s200_s4] sm:$0xff] }
  0x52   : > { %s392_s5 = sshll.u32 %s223_s22, 3  ;;  %s243_s6 = sadd.s32 8, %s393_s27  ;;  %v239_v3 = vsub.f32 %v237_v1, %v238_v2 }
  0x53   : > { %s225_s28 = scalar_lea.vmem [#allocation7], %s392_s5  ;;  %p394_p2 = scmp.gt.s32.totalorder %s243_s6, 8 }
  0x54   : > { %236 = vst [vmem:[%s225_s28] sm:$0xff] %v663_v0  ;;  %v240_v4 = vmul.f32 %v239_v3, %v239_v3 }
  0x55   : > { %247 = sbr.rel (%p394_p2) target bundleno = 95 (0x5f), region = 44 }
  0x5b   : > { %v248_v5 = vld [vmem:[%s225_s28] sm:$0xff] (!%p394_p2) }
  0x5c   : > { %v250_v6 = vadd.f32 %v248_v5, %v240_v4 }
  0x5e   : > { %251 = vst [vmem:[%s225_s28] sm:$0xff] %v250_v6 }
  0x5f PF: > { %p395_p10 = scmp.le.s32.totalorder %s243_s6, 8 }
  0x60   : > { %v256_v7 = vlaneseq (!%p395_p10)  ;;  %v258_v8 = vstv (!%p395_p10), %s393_s27 }
  0x61   : > { %255 = sbr.rel (%p395_p10) target bundleno = 107 (0x6b), region = 48 }
  0x62   : > { %v257_v9 = vshrl.u32 (!%p395_p10), %v256_v7, 7 }
  0x64   : > { %v259_v10 = vadd.s32 (!%p395_p10), %v258_v8, %v257_v9 }
  0x65   : > { %v262_v11 = vld [vmem:[%s225_s28] sm:$0xff] (!%p395_p10) }
  0x66   : > { %vm260_vm0 = vcmp.lt.s32.totalorder (!%p395_p10), %v259_v10, 8 }
  0x67   : > { %v261_v12 = vsel (!%p395_p10), %vm260_vm0, %v240_v4, 0.0 }
  0x68   : > { %v264_v13 = vadd.f32 %v262_v11, %v261_v12 }
  0x6a   : > { %265 = vst [vmem:[%s225_s28] sm:$0xff] %v264_v13 }
  0x6b PF: > { %s397_s21 = sshll.u32 %s651_s14, 7  ;;  %s280_s17 = sshll.u32 %s225_s28, 4  ;;  %s281_s17 = int_to_ptr.vmem [resolvable:$true] %s280_s17 }
  0x6c   : > { %s831_s12 = scalar_lea.hbm %s882_s2, %s397_s21  ;;  %s267_s18 = scalar_lea.sflag [#allocation4], %s223_s22 }
  0x6d   : > { %s552_s20 = scalar_lea.vmem %s281_s17, 128  ;;  %p895_p5 = scmp.ne.s32.totalorder %s887_s25, 0 }
  0x6e   : > { %p553_p3 = scmp.ne.s32.totalorder %s281_s17, %s552_s20  ;;  %s664_s23 = smov [#allocation7]  }
  0x6f   : > { %s556_s30 = sshll.u32 %s664_s23, 4  ;;  %s557_s30 = int_to_ptr.vmem [resolvable:$false] %s556_s30 }
  0x70   : > { %p554_p11 = pnand %p553_p3, %p895_p5  ;;  %s558_s3 = scalar_lea.vmem %s557_s30, 256 }
  0x71   : > { %p559_p7 = scmp.lt.s32.totalorder %s281_s17, %s557_s30  ;;  %p560_p4 = scmp.lt.s32.totalorder %s558_s3, %s552_s20 }
  0x72   : > { %p555_p1 = pneg %p554_p11 }
  0x73   : > { %p561_p13 = por %p560_p4, %p559_p7 }
  0x75   : > { %p562_p9 = pnand %p561_p13, %p555_p1 }
  0x77   : > { %565 = shalt.err (!%p562_p9)
}
  0x78   : > { %s566_s14 = scalar_lea.hbm %s831_s12, 128  ;;  %s570_s22 = scalar_lea.hbm %s882_s2, 256 }
  0x79   : > { %p567_p6 = scmp.ne.s32.totalorder %s831_s12, %s566_s14  ;;  %p571_p8 = scmp.lt.u32.totalorder %s831_s12, %s882_s2 }
  0x7a   : > { %p572_p2 = scmp.lt.u32.totalorder %s570_s22, %s566_s14  ;;  %p574_p3 = scmp.lt.u32.totalorder %s566_s14, %s831_s12 }
  0x7b   : > { %p568_p12 = pnand %p567_p6, %p895_p5 }
  0x7c   : > { %p573_p10 = por %p572_p2, %p571_p8 }
  0x7d   : > { %p569_p0 = pneg %p568_p12 }
  0x7e   : > { %p575_p11 = por %p574_p3, %p573_p10 }
  0x80   : > { %p576_p1 = pnand %p575_p11, %p569_p0 }
  0x82   : > { %579 = shalt.err (!%p576_p1)
}
  0x83   : > { %404 = dma.vmem_to_hbm [thread:$0]  (%p895_p5), %s281_s17, 128, %s831_s12, %s267_s18  }
  0x84 PF: > { %s292_s6 = sand.u32 1, %s631_s9   ;;  %p896_p7 = scmp.ne.s32.totalorder %s888_s26, 0 }
  0x85   : > { %p897_p4 = scmp.ge.s32.totalorder %s659_s16, 2  ;;  %s293_s28 = scalar_lea.sflag [#allocation4], %s292_s6 }
  0x87   : > { %p414_p13 = pnand %p897_p4, %p896_p7 }
  0x89   : > { %625 = dma.done.wait (!%p414_p13), %s293_s28, 128  }
  0x8a   : > { %627 = vsyncadd (!%p414_p13), %s293_s28, 4294967168  ;;  %s21_s16 = sadd.s32 1, %s659_s16   ;;  %s898_s9 = smov %s635_s10 }
  0x8b   : > { %p18_p9 = scmp.ge.s32.totalorder %s21_s16, 4   ;;  %s899_s10 = smov %s639_s11 }
  0x8c   : > { %s900_s11 = smov %s738_s24  ;;  %s901_s12 = smov %s647_s13 }
  0x8d   : > { %s870_s13 = smov 0   ;;  %s902_s14 = smov %s655_s15 }
  0x8e   : > { %s903_s15 = smov %s905_s19  ;;  %20 = sbr.rel (!%p18_p9) target bundleno = 9 (0x9), region = 98 }
  0x95   :  { %298 = vsyncpa [#allocation3], 1 }
  0x96   :  { %300 = vsyncpa [#allocation3 + $0x1], 1 }
  0x97   :  { %301 = vsyncpa [#allocation6], 1 }
  0x98   :  { %303 = vsyncpa [#allocation6 + $0x1], 1 }
  0x99   :  { %304 = vsyncpa [#allocation4], 1 }
  0x9a   :  { %306 = vsyncpa [#allocation4 + $0x1], 1 }

</bundles_post_ra>
